<compile_context>
chip_gen: v5e
topology: v5e:2x2
jax: 0.10.0
libtpu: 0.0.40
codegen_flags: <defaults>
</compile_context>

<pallas_src>
import jax
import jax.numpy as jnp
from jax.experimental import pallas as pl
from jax.experimental.pallas import tpu as pltpu


def rnn_last_fc_kernel(x_ref,        # (B, T, I)     VMEM
                       wih_aug_ref,  # (I+1, H)      VMEM  rows 0..I-1 = W_ih^T, row I = b_ih + b_hh
                       whh_ref,      # (H, H)        VMEM  (= W_hh^T)
                       wfc_aug_ref,  # (H+1, O_pad)  VMEM  rows 0..H-1 = W_fc^T (lane-padded), row H = b_fc
                       out_ref):     # (B, O_pad)    VMEM  lane-dense output slab
    B, T, I = x_ref.shape
    H = whh_ref.shape[0]

    # Static row slices of the augmented buffers (zero-cost views at prep-time
    # aligned offsets; I and H are multiples of 8).
    wih = wih_aug_ref[:I, :]          # (I, H)
    bih = wih_aug_ref[I:I + 1, :]     # (1, H)  folded b_ih + b_hh
    whh = whh_ref[...]                # (H, H)  bind once, hoisted out of the loop

    # Hoisted input projection for ALL timesteps as one MXU matmul, fully off
    # the serial recurrence chain.  Reshape only merges/splits leading dims
    # (lane dim I / H untouched), so it's layout-cheap.
    x2 = x_ref[...].reshape(B * T, I)                                  # row b*T + t
    xp = (jnp.dot(x2, wih, preferred_element_type=jnp.float32) + bih)  # (B*T, H)
    xp = xp.reshape(B, T, H)

    # Hidden state lives in vregs; T is static & tiny so the loop fully
    # unrolls and the LLO scheduler overlaps MXU push / EUP tanh / VPU add of
    # adjacent steps where the data deps allow.
    h = jnp.zeros((B, H), jnp.float32)
    for t in range(T):
        h = jnp.tanh(xp[:, t, :]
                     + jnp.dot(h, whh, preferred_element_type=jnp.float32))

    # FC epilogue straight from the register-carried h_T, lane-dense store.
    wfc = wfc_aug_ref[:H, :]          # (H, O_pad)
    bfc = wfc_aug_ref[H:H + 1, :]     # (1, O_pad)
    out_ref[...] = jnp.dot(h, wfc, preferred_element_type=jnp.float32) + bfc


def prepare_simple_rnn_params(params):
    """One-time parameter packing (NOT per forward call).

    Returns buffers already oriented / folded / lane-padded for the kernel.
    """
    H, I = params["w_ih"].shape
    O = params["w_fc"].shape[0]
    o_pad = ((O + 127) // 128) * 128

    wih_aug = jnp.concatenate(
        [params["w_ih"].T.astype(jnp.float32),
         (params["b_ih"] + params["b_hh"]).reshape(1, H).astype(jnp.float32)],
        axis=0)                                            # (I+1, H)

    whh_t = params["w_hh"].T.astype(jnp.float32)           # (H, H)

    wfc_aug = jnp.zeros((H + 1, o_pad), jnp.float32)
    wfc_aug = wfc_aug.at[:H, :O].set(params["w_fc"].T.astype(jnp.float32))
    wfc_aug = wfc_aug.at[H, :O].set(params["b_fc"].astype(jnp.float32))

    return {"wih_aug": wih_aug, "whh_t": whh_t, "wfc_aug": wfc_aug, "out_size": O}


def simple_rnn_forward(x, prep):
    """x: (B, T, I) float32 (batch_first, like PyTorch). Returns (B, O) float32."""
    B, T, I = x.shape
    o_pad = prep["wfc_aug"].shape[1]

    vmem_spec = pl.BlockSpec(memory_space=pltpu.MemorySpace.VMEM)

    out_pad = pl.pallas_call(
        rnn_last_fc_kernel,
        out_shape=jax.ShapeDtypeStruct((B, o_pad), jnp.float32),
        in_specs=[vmem_spec] * 4,
        out_specs=vmem_spec,
    )(x, prep["wih_aug"], prep["whh_t"], prep["wfc_aug"])

    return out_pad[:, :prep["out_size"]]


def simple_rnn_reference(x, params):
    """Pure-JAX reference matching PyTorch nn.RNN(batch_first=True) + Linear."""
    B, T, I = x.shape
    H = params["w_hh"].shape[0]
    h = jnp.zeros((B, H), jnp.float32)
    for t in range(T):
        h = jnp.tanh(x[:, t, :] @ params["w_ih"].T + params["b_ih"]
                     + h @ params["w_hh"].T + params["b_hh"])
    return h @ params["w_fc"].T + params["b_fc"]


if __name__ == "__main__":
    # small shapes implied by the module: batch=2, seq=8, input=16, hidden=32, output=4
    B, T, I, H, O = 2, 8, 16, 32, 4

    key = jax.random.PRNGKey(0)
    keys = jax.random.split(key, 7)
    scale = 0.1
    params = {
        "w_ih": scale * jax.random.normal(keys[0], (H, I), jnp.float32),
        "w_hh": scale * jax.random.normal(keys[1], (H, H), jnp.float32),
        "b_ih": scale * jax.random.normal(keys[2], (H,), jnp.float32),
        "b_hh": scale * jax.random.normal(keys[3], (H,), jnp.float32),
        "w_fc": scale * jax.random.normal(keys[4], (O, H), jnp.float32),
        "b_fc": scale * jax.random.normal(keys[5], (O,), jnp.float32),
    }
    x = jax.random.normal(keys[6], (B, T, I), jnp.float32)

    prep = prepare_simple_rnn_params(params)   # one-time packing, not per call

    out = simple_rnn_forward(x, prep)
    out = jax.block_until_ready(out)

    ref = simple_rnn_reference(x, params)
    assert out.shape == (B, O)
    assert jnp.allclose(out, ref, atol=1e-5, rtol=1e-5), "mismatch vs reference"

    print("KERNEL_OK")
</pallas_src>

<mosaic_0001>
module attributes {stable_mosaic.version = 11 : i64} {
  func.func @rnn_last_fc_kernel(%arg0: memref<2x8x16xf32, #tpu.memory_space<vmem>>, %arg1: memref<17x32xf32, #tpu.memory_space<vmem>>, %arg2: memref<32x32xf32, #tpu.memory_space<vmem>>, %arg3: memref<33x128xf32, #tpu.memory_space<vmem>>, %arg4: memref<2x128xf32, #tpu.memory_space<vmem>>) attributes {dimension_semantics = [], scalar_prefetch = 0 : i64, scratch_operands = 0 : i64, tpu.core_type = #tpu.core_type<tc>} {
    %c0 = arith.constant 0 : index
    %c0_0 = arith.constant 0 : index
    %0 = vector.load %arg1[%c0, %c0_0] : memref<17x32xf32, #tpu.memory_space<vmem>>, vector<16x32xf32>
    %c16 = arith.constant 16 : index
    %c0_1 = arith.constant 0 : index
    %1 = vector.load %arg1[%c16, %c0_1] : memref<17x32xf32, #tpu.memory_space<vmem>>, vector<1x32xf32>
    %c0_2 = arith.constant 0 : index
    %c0_3 = arith.constant 0 : index
    %2 = vector.load %arg2[%c0_2, %c0_3] : memref<32x32xf32, #tpu.memory_space<vmem>>, vector<32x32xf32>
    %c0_4 = arith.constant 0 : index
    %c0_5 = arith.constant 0 : index
    %c0_6 = arith.constant 0 : index
    %3 = vector.load %arg0[%c0_4, %c0_5, %c0_6] : memref<2x8x16xf32, #tpu.memory_space<vmem>>, vector<2x8x16xf32>
    %4 = vector.shape_cast %3 : vector<2x8x16xf32> to vector<16x16xf32>
    %cst = arith.constant dense<0.000000e+00> : vector<16x32xf32>
    %5 = tpu.matmul %4, %0, %cst {dimension_numbers = #tpu.dot_dimension_numbers<[1], [0], [0], [1], [0, 0, 1, 1], [], []>} : vector<16x16xf32>, vector<16x32xf32>, vector<16x32xf32> -> vector<16x32xf32>
    %6 = vector.broadcast %1 : vector<1x32xf32> to vector<16x32xf32>
    %7 = arith.addf %5, %6 : vector<16x32xf32>
    %8 = vector.shape_cast %7 : vector<16x32xf32> to vector<2x8x32xf32>
    %cst_7 = arith.constant 0.000000e+00 : f32
    %9 = vector.broadcast %cst_7 : f32 to vector<2x32xf32>
    %10 = vector.extract_strided_slice %8 {offsets = [0, 0, 0], sizes = [2, 1, 32], strides = [1, 1, 1]} : vector<2x8x32xf32> to vector<2x1x32xf32>
    %11 = vector.shape_cast %10 : vector<2x1x32xf32> to vector<2x32xf32>
    %cst_8 = arith.constant dense<0.000000e+00> : vector<2x32xf32>
    %12 = tpu.matmul %9, %2, %cst_8 {dimension_numbers = #tpu.dot_dimension_numbers<[1], [0], [0], [1], [0, 0, 1, 1], [], []>} : vector<2x32xf32>, vector<32x32xf32>, vector<2x32xf32> -> vector<2x32xf32>
    %13 = arith.addf %11, %12 : vector<2x32xf32>
    %14 = math.tanh %13 : vector<2x32xf32>
    %15 = vector.extract_strided_slice %8 {offsets = [0, 1, 0], sizes = [2, 1, 32], strides = [1, 1, 1]} : vector<2x8x32xf32> to vector<2x1x32xf32>
    %16 = vector.shape_cast %15 : vector<2x1x32xf32> to vector<2x32xf32>
    %cst_9 = arith.constant dense<0.000000e+00> : vector<2x32xf32>
    %17 = tpu.matmul %14, %2, %cst_9 {dimension_numbers = #tpu.dot_dimension_numbers<[1], [0], [0], [1], [0, 0, 1, 1], [], []>} : vector<2x32xf32>, vector<32x32xf32>, vector<2x32xf32> -> vector<2x32xf32>
    %18 = arith.addf %16, %17 : vector<2x32xf32>
    %19 = math.tanh %18 : vector<2x32xf32>
    %20 = vector.extract_strided_slice %8 {offsets = [0, 2, 0], sizes = [2, 1, 32], strides = [1, 1, 1]} : vector<2x8x32xf32> to vector<2x1x32xf32>
    %21 = vector.shape_cast %20 : vector<2x1x32xf32> to vector<2x32xf32>
    %cst_10 = arith.constant dense<0.000000e+00> : vector<2x32xf32>
    %22 = tpu.matmul %19, %2, %cst_10 {dimension_numbers = #tpu.dot_dimension_numbers<[1], [0], [0], [1], [0, 0, 1, 1], [], []>} : vector<2x32xf32>, vector<32x32xf32>, vector<2x32xf32> -> vector<2x32xf32>
    %23 = arith.addf %21, %22 : vector<2x32xf32>
    %24 = math.tanh %23 : vector<2x32xf32>
    %25 = vector.extract_strided_slice %8 {offsets = [0, 3, 0], sizes = [2, 1, 32], strides = [1, 1, 1]} : vector<2x8x32xf32> to vector<2x1x32xf32>
    %26 = vector.shape_cast %25 : vector<2x1x32xf32> to vector<2x32xf32>
    %cst_11 = arith.constant dense<0.000000e+00> : vector<2x32xf32>
    %27 = tpu.matmul %24, %2, %cst_11 {dimension_numbers = #tpu.dot_dimension_numbers<[1], [0], [0], [1], [0, 0, 1, 1], [], []>} : vector<2x32xf32>, vector<32x32xf32>, vector<2x32xf32> -> vector<2x32xf32>
    %28 = arith.addf %26, %27 : vector<2x32xf32>
    %29 = math.tanh %28 : vector<2x32xf32>
    %30 = vector.extract_strided_slice %8 {offsets = [0, 4, 0], sizes = [2, 1, 32], strides = [1, 1, 1]} : vector<2x8x32xf32> to vector<2x1x32xf32>
    %31 = vector.shape_cast %30 : vector<2x1x32xf32> to vector<2x32xf32>
    %cst_12 = arith.constant dense<0.000000e+00> : vector<2x32xf32>
    %32 = tpu.matmul %29, %2, %cst_12 {dimension_numbers = #tpu.dot_dimension_numbers<[1], [0], [0], [1], [0, 0, 1, 1], [], []>} : vector<2x32xf32>, vector<32x32xf32>, vector<2x32xf32> -> vector<2x32xf32>
    %33 = arith.addf %31, %32 : vector<2x32xf32>
    %34 = math.tanh %33 : vector<2x32xf32>
    %35 = vector.extract_strided_slice %8 {offsets = [0, 5, 0], sizes = [2, 1, 32], strides = [1, 1, 1]} : vector<2x8x32xf32> to vector<2x1x32xf32>
    %36 = vector.shape_cast %35 : vector<2x1x32xf32> to vector<2x32xf32>
    %cst_13 = arith.constant dense<0.000000e+00> : vector<2x32xf32>
    %37 = tpu.matmul %34, %2, %cst_13 {dimension_numbers = #tpu.dot_dimension_numbers<[1], [0], [0], [1], [0, 0, 1, 1], [], []>} : vector<2x32xf32>, vector<32x32xf32>, vector<2x32xf32> -> vector<2x32xf32>
    %38 = arith.addf %36, %37 : vector<2x32xf32>
    %39 = math.tanh %38 : vector<2x32xf32>
    %40 = vector.extract_strided_slice %8 {offsets = [0, 6, 0], sizes = [2, 1, 32], strides = [1, 1, 1]} : vector<2x8x32xf32> to vector<2x1x32xf32>
    %41 = vector.shape_cast %40 : vector<2x1x32xf32> to vector<2x32xf32>
    %cst_14 = arith.constant dense<0.000000e+00> : vector<2x32xf32>
    %42 = tpu.matmul %39, %2, %cst_14 {dimension_numbers = #tpu.dot_dimension_numbers<[1], [0], [0], [1], [0, 0, 1, 1], [], []>} : vector<2x32xf32>, vector<32x32xf32>, vector<2x32xf32> -> vector<2x32xf32>
    %43 = arith.addf %41, %42 : vector<2x32xf32>
    %44 = math.tanh %43 : vector<2x32xf32>
    %45 = vector.extract_strided_slice %8 {offsets = [0, 7, 0], sizes = [2, 1, 32], strides = [1, 1, 1]} : vector<2x8x32xf32> to vector<2x1x32xf32>
    %46 = vector.shape_cast %45 : vector<2x1x32xf32> to vector<2x32xf32>
    %cst_15 = arith.constant dense<0.000000e+00> : vector<2x32xf32>
    %47 = tpu.matmul %44, %2, %cst_15 {dimension_numbers = #tpu.dot_dimension_numbers<[1], [0], [0], [1], [0, 0, 1, 1], [], []>} : vector<2x32xf32>, vector<32x32xf32>, vector<2x32xf32> -> vector<2x32xf32>
    %48 = arith.addf %46, %47 : vector<2x32xf32>
    %49 = math.tanh %48 : vector<2x32xf32>
    %c0_16 = arith.constant 0 : index
    %c0_17 = arith.constant 0 : index
    %50 = vector.load %arg3[%c0_16, %c0_17] : memref<33x128xf32, #tpu.memory_space<vmem>>, vector<32x128xf32>
    %c32 = arith.constant 32 : index
    %c0_18 = arith.constant 0 : index
    %51 = vector.load %arg3[%c32, %c0_18] : memref<33x128xf32, #tpu.memory_space<vmem>>, vector<1x128xf32>
    %cst_19 = arith.constant dense<0.000000e+00> : vector<2x128xf32>
    %52 = tpu.matmul %49, %50, %cst_19 {dimension_numbers = #tpu.dot_dimension_numbers<[1], [0], [0], [1], [0, 0, 1, 1], [], []>} : vector<2x32xf32>, vector<32x128xf32>, vector<2x128xf32> -> vector<2x128xf32>
    %53 = vector.broadcast %51 : vector<1x128xf32> to vector<2x128xf32>
    %54 = arith.addf %52, %53 : vector<2x128xf32>
    %c0_20 = arith.constant 0 : index
    %c0_21 = arith.constant 0 : index
    %55 = vector.load %arg4[%c0_20, %c0_21] : memref<2x128xf32, #tpu.memory_space<vmem>>, vector<2x128xf32>
    tpu.vector_store %arg4[%c0_20, %c0_21], %54 {strides = array<i32>} : memref<2x128xf32, #tpu.memory_space<vmem>>, vector<2x128xf32>,
    return
  }
}

</mosaic_0001>

<bundles_post_ra>
// kernel: tpu_custom_call.1
= control target key start
LH: loop header
LB: loop body
LE: loop exit
PB: predicated region body
PF: predicated region fallthrough
CT: control target
= control target key end

     0   :  { %9 = vsyncpa [#allocation3], 0  ;;  %s722_s0 = inlined_call_operand.hbm [shape: f32[2,8,16], index: 0, kind: input, shape index: {}]   ;;  %s723_s1 = inlined_call_operand.hbm [shape: f32[17,32], index: 1, kind: input, shape index: {}]   ;;  %s724_s2 = inlined_call_operand.hbm [shape: f32[32,32], index: 2, kind: input, shape index: {}]   ;;  %s725_s3 = inlined_call_operand.hbm [shape: f32[33,128], index: 3, kind: input, shape index: {}]   ;;  %s726_s4 = inlined_call_operand.hbm [shape: f32[2,128], index: 4, kind: output, shape index: {}]  }
   0x1   :  { %10 = vsyncpa [#allocation6], 0 }
   0x2   :  { %11 = vsyncpa [#allocation9], 0 }
   0x3   :  { %12 = vsyncpa [#allocation4], 0  ;;  %s30_s17 = sshll.u32 %s723_s1, 4  ;;  %s636_s18 = smov [#allocation5]   ;;  %s31_s17 = int_to_ptr.hbm [resolvable:$true] %s30_s17 }
   0x4   :  { %s32_s19 = sshll.u32 %s636_s18, 4  ;;  %s17_s22 = sshll.u32 %s722_s0, 4  ;;  %s33_s19 = int_to_ptr.vmem [resolvable:$true] %s32_s19  ;;  %s18_s22 = int_to_ptr.hbm [resolvable:$true] %s17_s22 }
   0x5   :  { %s637_s23 = smov 128   ;;  %s638_s24 = smov 8  }
   0x6   :  { %38 = dma.hbm_to_vmem [thread:$0]  %s31_s17, 384, %s33_s19, [#allocation6], %s637_s23, %s637_s23, %s638_s24  }
   0x7   :  { %s639_s25 = smov [#allocation2]   ;;  %s43_s29 = sshll.u32 %s724_s2, 4  ;;  %s44_s29 = int_to_ptr.hbm [resolvable:$true] %s43_s29 }
   0x8   :  { %s19_s26 = sshll.u32 %s639_s25, 4  ;;  %s56_s5 = sshll.u32 %s725_s3, 4  ;;  %s20_s26 = int_to_ptr.vmem [resolvable:$true] %s19_s26  ;;  %s57_s5 = int_to_ptr.hbm [resolvable:$true] %s56_s5 }
   0x9   :  { %25 = dma.hbm_to_vmem [thread:$0]  %s18_s22, 256, %s20_s26, [#allocation3], %s637_s23, %s637_s23, %s638_s24  }
   0xa   :  { %s640_s6 = smov [#allocation7]   ;;  %s641_s0 = smov [#allocation8]  }
   0xb   :  { %s45_s7 = sshll.u32 %s640_s6, 4  ;;  %s58_s8 = sshll.u32 %s641_s0, 4  ;;  %s46_s7 = int_to_ptr.vmem [resolvable:$true] %s45_s7  ;;  %s59_s8 = int_to_ptr.vmem [resolvable:$true] %s58_s8 }
   0xc   :  { %51 = dma.hbm_to_vmem [thread:$0]  %s44_s29, 512, %s46_s7, [#allocation6], %s637_s23, %s637_s23, %s638_s24  }
   0xd   :  { %64 = dma.hbm_to_vmem [thread:$0]  %s57_s5, 640, %s59_s8, [#allocation9], %s637_s23, %s637_s23, %s638_s24  }
   0xe   :  { %628 = dma.done.wait [#allocation3], 256  }
   0xf   :  { %629 = vsyncadd [#allocation3], 4294967040 }
  0x10   :  { %630 = dma.done.wait [#allocation6], 896  }
  0x11   :  { %631 = vsyncadd [#allocation6], 4294966400 }
  0x12   :  { %632 = dma.done.wait [#allocation9], 640  }
  0x13   :  { %633 = vsyncadd [#allocation9], 4294966656  ;;  %v82_v0 = vld [vmem:[#allocation5 + $0x8] sm:$0xff]  ;;  %v87_v1 = vld [vmem:[#allocation7 + $0x18] sm:$0xff]  ;;  %vm91_vm0 = vcmask 130048   ;;  %v642_v7 = vmov 0.0  }
  0x14   :  { %v81_v2 = vld [vmem:[#allocation5] sm:$0xff]  ;;  %112 = vmatpush.msra.mxu0 %v82_v0  ;;  %137 = vmatpush.msra.mxu1 %v87_v1  ;;  %v86_v3 = vld [vmem:[#allocation7 + $0x10] sm:$0xff]  ;;  %v88_v4 = vld [vmem:[#allocation2] sm:$0xff]  ;;  %vm156_vm1 = vcmask 1041409   ;;  %vm121_vm2 = vcmask 261120   ;;  %s643_s2 = smov [#allocation10]  }
  0x15   :  { %v85_v5 = vld [vmem:[#allocation7 + $0x8] sm:$0xff]  ;;  %172 = vmatpush.msra.mxu2 %v87_v1  ;;  %206 = vmatpush.msra.mxu3 %v87_v1  ;;  %v84_v6 = vld [vmem:[#allocation7] sm:$0xff]  ;;  %v474_v10 = vld [vmem:[#allocation5 + $0x10] ss:$0 sm:$0xff]  ;;  %s442_s3 = sshll.u32 %s643_s2, 4  ;;  %s444_s11 = sshll.u32 %s726_s4, 4  ;;  %s443_s3 = int_to_ptr.vmem [resolvable:$true] %s442_s3  ;;  %s445_s11 = int_to_ptr.hbm [resolvable:$true] %s444_s11 }
  0x16   :  { %113 = vmatpush.msra.mxu0 %v81_v2  ;;  %138 = vmatpush.msra.mxu1 %v86_v3  ;;  %v89_v8 = vld [vmem:[#allocation2 + $0x8] sm:$0xff] }
  0x17   :  { %456 = vmatmul.msk.f32.vlgmr.msra.gmra.mxu0 %vm91_vm0, %v88_v4  ;;  %173 = vmatpush.msra.mxu2 %v86_v3 }
  0x18   :  { %139 = vmatpush.msra.mxu1 %v85_v5  ;;  %207 = vmatpush.msra.mxu3 %v86_v3 }
  0x19   :  { %174 = vmatpush.msra.mxu2 %v85_v5  ;;  %350 = vmatpush.msrb.mxu0 %v87_v1 }
  0x1a   :  { %140 = vmatpush.msra.mxu1 %v84_v6  ;;  %208 = vmatpush.msra.mxu3 %v85_v5 }
  0x1b   :  { %141 = vmatmul.f32.vlgmr.msra.gmra.mxu1 %v642_v7  ;;  %175 = vmatpush.msra.mxu2 %v84_v6 }
  0x1c   :  { %209 = vmatpush.msra.mxu3 %v84_v6  ;;  %242 = vmatpush.msrb.mxu1 %v87_v1 }
  0x1d   :  { %278 = vmatpush.msrb.mxu2 %v87_v1  ;;  %351 = vmatpush.msrb.mxu0 %v86_v3 }
  0x1e   :  { %314 = vmatpush.msrb.mxu3 %v87_v1  ;;  %243 = vmatpush.msrb.mxu1 %v86_v3 }
  0x1f   :  { %457 = vmatmul.msk.f32.gmra.mxu0 %vm91_vm0, %v89_v8  ;;  %279 = vmatpush.msrb.mxu2 %v86_v3 }
  0x20   :  { %244 = vmatpush.msrb.mxu1 %v85_v5  ;;  %315 = vmatpush.msrb.mxu3 %v86_v3 }
  0x21   :  { %280 = vmatpush.msrb.mxu2 %v85_v5  ;;  %352 = vmatpush.msrb.mxu0 %v85_v5 }
  0x22   :  { %245 = vmatpush.msrb.mxu1 %v84_v6  ;;  %316 = vmatpush.msrb.mxu3 %v85_v5 }
  0x23   :  { %281 = vmatpush.msrb.mxu2 %v84_v6  ;;  %353 = vmatpush.msrb.mxu0 %v84_v6 }
  0x24   :  { %317 = vmatpush.msrb.mxu3 %v84_v6  ;;  %386 = vmatpush.msra.mxu1 %v87_v1 }
  0x26   :  { %387 = vmatpush.msra.mxu1 %v86_v3 }
  0x28   :  { %388 = vmatpush.msra.mxu1 %v85_v5 }
  0x2a   :  { %389 = vmatpush.msra.mxu1 %v84_v6 }
  0x94   :  { %v115_v9 = vpop.f32.mrf.mxu0 }
  0x95   :  { %v683_v14 = vadd.f32 %v474_v10, %v115_v9 }
  0x98   :  { %v142_v11 = vpop.f32.mrf.mxu1 }
  0x99   :  { %v146_v12 = vrot.slane %v142_v11, 1  ;;  %v149_v16 = vadd.f32 %v142_v11, %v683_v14 }
  0x9c   :  { %v118_v13 = vpop.f32.mrf.mxu0 }
  0x9d   :  { %v685_v15 = vadd.f32 %v474_v10, %v118_v13 }
  0x9f   :  { %v150_v17 = vadd.f32 %v146_v12, %v685_v15 }
  0xa1   :  { %476 = vtanh.f32 %v150_v17 }
  0xa2   :  { %478 = vtanh.f32 %v149_v16 }
  0xa7   :  { %v477_v18 = vpop.eup %476 }
  0xa8   :  { %v155_v19 = vrot.slane %v477_v18, 7  ;;  %v479_v20 = vpop.eup %478  ;;  %v406_v18 = vld [vmem:[#allocation8 + $0x18] sm:$0xff] }
  0xaa   :  { %v157_v21 = vsel %vm156_vm1, %v155_v19, %v479_v20  ;;  %v405_v19 = vld [vmem:[#allocation8 + $0x10] sm:$0xff]  ;;  %v404_v20 = vld [vmem:[#allocation8 + $0x8] sm:$0xff] }
  0xab   :  { %458 = vmatmul.msk.f32.vlgmr.msra.gmra.mxu2 %vm121_vm2, %v157_v21  ;;  %v403_v21 = vld [vmem:[#allocation8] sm:$0xff] }
  0xac   :  { %428 = vmatpush.msra.mxu2 %v406_v18 }
  0xae   :  { %429 = vmatpush.msra.mxu2 %v405_v19 }
  0xb0   :  { %430 = vmatpush.msra.mxu2 %v404_v20 }
  0xb2   :  { %431 = vmatpush.msra.mxu2 %v403_v21 }
 0x12e   :  { %v177_v22 = vpop.f32.mrf.mxu2 }
 0x12f   :  { %v181_v23 = vrot.slane %v177_v22, 7  ;;  %v185_v25 = vadd.f32 %v177_v22, %v685_v15 }
 0x131   :  { %v184_v24 = vadd.f32 %v181_v23, %v683_v14 }
 0x133   :  { %480 = vtanh.f32 %v184_v24 }
 0x134   :  { %482 = vtanh.f32 %v185_v25 }
 0x139   :  { %v481_v26 = vpop.eup %480 }
 0x13a   :  { %v190_v27 = vrot.slane %v481_v26, 1  ;;  %v483_v28 = vpop.eup %482 }
 0x13c   :  { %v191_v29 = vsel %vm156_vm1, %v483_v28, %v190_v27 }
 0x13d   :  { %459 = vmatmul.msk.f32.vlgmr.msra.gmra.mxu3 %vm121_vm2, %v191_v29 }
 0x1c0   :  { %v211_v30 = vpop.f32.mrf.mxu3 }
 0x1c1   :  { %v215_v31 = vrot.slane %v211_v30, 6  ;;  %v216_v32 = vrot.slane %v211_v30, 7 }
 0x1c3   :  { %v219_v33 = vadd.f32 %v215_v31, %v683_v14  ;;  %v220_v34 = vadd.f32 %v216_v32, %v685_v15  ;;  %v475_v32 = vld [vmem:[#allocation8 + $0x20] ss:$0 sm:$0xff] }
 0x1c5   :  { %484 = vtanh.f32 %v219_v33 }
 0x1c6   :  { %486 = vtanh.f32 %v220_v34 }
 0x1cb   :  { %v485_v35 = vpop.eup %484 }
 0x1cc   :  { %v487_v36 = vpop.eup %486  ;;  %v225_v37 = vrot.slane %v485_v35, 2 }
 0x1cd   :  { %v226_v38 = vrot.slane %v487_v36, 1 }
 0x1cf   :  { %v227_v39 = vsel %vm156_vm1, %v226_v38, %v225_v37 }
 0x1d0   :  { %460 = vmatmul.msk.f32.vlgmr.msrb.gmra.mxu1 %vm121_vm2, %v227_v39 }
 0x24d   :  { %v247_v40 = vpop.f32.mrf.mxu1 }
 0x24e   :  { %v251_v41 = vrot.slane %v247_v40, 5  ;;  %v252_v42 = vrot.slane %v247_v40, 6 }
 0x250   :  { %v255_v43 = vadd.f32 %v251_v41, %v683_v14  ;;  %v256_v44 = vadd.f32 %v252_v42, %v685_v15 }
 0x252   :  { %488 = vtanh.f32 %v255_v43 }
 0x253   :  { %490 = vtanh.f32 %v256_v44 }
 0x258   :  { %v489_v45 = vpop.eup %488 }
 0x259   :  { %v491_v46 = vpop.eup %490  ;;  %v261_v47 = vrot.slane %v489_v45, 3 }
 0x25a   :  { %v262_v48 = vrot.slane %v491_v46, 2 }
 0x25c   :  { %v263_v49 = vsel %vm156_vm1, %v262_v48, %v261_v47 }
 0x25d   :  { %461 = vmatmul.msk.f32.vlgmr.msrb.gmra.mxu2 %vm121_vm2, %v263_v49 }
 0x2e0   :  { %v283_v50 = vpop.f32.mrf.mxu2 }
 0x2e1   :  { %v287_v51 = vrot.slane %v283_v50, 4  ;;  %v288_v52 = vrot.slane %v283_v50, 5 }
 0x2e3   :  { %v291_v53 = vadd.f32 %v287_v51, %v683_v14  ;;  %v292_v54 = vadd.f32 %v288_v52, %v685_v15 }
 0x2e5   :  { %492 = vtanh.f32 %v291_v53 }
 0x2e6   :  { %494 = vtanh.f32 %v292_v54 }
 0x2eb   :  { %v493_v55 = vpop.eup %492 }
 0x2ec   :  { %v495_v56 = vpop.eup %494  ;;  %v297_v57 = vrot.slane %v493_v55, 4 }
 0x2ed   :  { %v298_v58 = vrot.slane %v495_v56, 3 }
 0x2ef   :  { %v299_v59 = vsel %vm156_vm1, %v298_v58, %v297_v57 }
 0x2f0   :  { %462 = vmatmul.msk.f32.vlgmr.msrb.gmra.mxu3 %vm121_vm2, %v299_v59 }
 0x373   :  { %v319_v60 = vpop.f32.mrf.mxu3 }
 0x374   :  { %v323_v61 = vrot.slane %v319_v60, 3  ;;  %v324_v62 = vrot.slane %v319_v60, 4 }
 0x376   :  { %v327_v63 = vadd.f32 %v323_v61, %v683_v14  ;;  %v328_v0 = vadd.f32 %v324_v62, %v685_v15 }
 0x378   :  { %496 = vtanh.f32 %v327_v63 }
 0x379   :  { %498 = vtanh.f32 %v328_v0 }
 0x37e   :  { %v497_v1 = vpop.eup %496 }
 0x37f   :  { %v499_v2 = vpop.eup %498  ;;  %v333_v3 = vrot.slane %v497_v1, 5 }
 0x380   :  { %v334_v4 = vrot.slane %v499_v2, 4 }
 0x382   :  { %v335_v5 = vsel %vm156_vm1, %v334_v4, %v333_v3 }
 0x383   :  { %463 = vmatmul.msk.f32.vlgmr.msrb.gmra.mxu0 %vm121_vm2, %v335_v5 }
 0x400   :  { %v355_v6 = vpop.f32.mrf.mxu0 }
 0x401   :  { %v359_v7 = vrot.slane %v355_v6, 2  ;;  %v360_v8 = vrot.slane %v355_v6, 3 }
 0x403   :  { %v363_v9 = vadd.f32 %v359_v7, %v683_v14  ;;  %v364_v10 = vadd.f32 %v360_v8, %v685_v15 }
 0x405   :  { %500 = vtanh.f32 %v363_v9 }
 0x406   :  { %502 = vtanh.f32 %v364_v10 }
 0x40b   :  { %v501_v11 = vpop.eup %500 }
 0x40c   :  { %v503_v12 = vpop.eup %502  ;;  %v369_v13 = vrot.slane %v501_v11, 6 }
 0x40d   :  { %v370_v16 = vrot.slane %v503_v12, 5 }
 0x40f   :  { %v371_v17 = vsel %vm156_vm1, %v370_v16, %v369_v13 }
 0x410   :  { %464 = vmatmul.msk.f32.vlgmr.msra.gmra.mxu1 %vm121_vm2, %v371_v17 }
 0x48d   :  { %v391_v22 = vpop.f32.mrf.mxu1 }
 0x48e   :  { %v395_v23 = vrot.slane %v391_v22, 1  ;;  %v396_v24 = vrot.slane %v391_v22, 2 }
 0x490   :  { %v399_v25 = vadd.f32 %v395_v23, %v683_v14  ;;  %v400_v26 = vadd.f32 %v396_v24, %v685_v15 }
 0x492   :  { %504 = vtanh.f32 %v399_v25 }
 0x493   :  { %506 = vtanh.f32 %v400_v26 }
 0x498   :  { %v505_v27 = vpop.eup %504 }
 0x499   :  { %v507_v28 = vpop.eup %506  ;;  %v411_v29 = vrot.slane %v505_v27, 7 }
 0x49a   :  { %v412_v30 = vrot.slane %v507_v28, 6 }
 0x49c   :  { %v413_v31 = vsel %vm156_vm1, %v412_v30, %v411_v29 }
 0x49d   :  { %465 = vmatmul.msk.f32.vlgmr.msra.gmra.mxu2 %vm121_vm2, %v413_v31 }
 0x520   :  { %v433_v14 = vpop.f32.mrf.mxu2 }
 0x521   :  { %v434_v33 = vadd.f32 %v475_v32, %v433_v14 }
 0x523   :  { %436 = vst [vmem:[#allocation10] sm:$0x3] %v434_v33 }
 0x524   :  { %447 = dma.vmem_to_hbm [thread:$0]  %s443_s3, 32, %s445_s11, [#allocation4]  }
 0x525   :  { %634 = dma.done.wait [#allocation4], 32  }
 0x526   :  { %635 = vsyncadd [#allocation4], 4294967264 }
 0x527   :  { %452 = vsyncpa [#allocation3], 1 }
 0x528   :  { %453 = vsyncpa [#allocation6], 1 }
 0x529   :  { %454 = vsyncpa [#allocation9], 1 }
 0x52a   :  { %455 = vsyncpa [#allocation4], 1 }

</bundles_post_ra>
